<compile_context>
chip_gen: v7x
topology: tpu7x:2x2x1
jax: 0.10.0
libtpu: 0.0.40
codegen_flags: <defaults>
</compile_context>

<pallas_src>
import functools

import jax
import jax.numpy as jnp
from jax import lax
from jax.experimental import pallas as pl
from jax.experimental.pallas import tpu as pltpu


def _rdb_conv_kernel(x_ref, w_ref, b_ref, m_ref, o_ref, *, width, compute_dtype):
    # x_ref: (Nb, Cin, HW)       input (channels on sublanes, flat spatial on lanes)
    # w_ref: (9, Cout, Cin)      per-tap conv weights, tap t = kh*3 + kw
    # b_ref: (Cout, 1)           bias
    # m_ref: (9, HW)             per-tap halo masks (row AND col validity), {0,1}
    # o_ref: (Nb, Cin+Cout, HW)  output = concat([x, relu(conv(x)+b)], channels)
    nb, cin, hw = x_ref.shape
    cout = w_ref.shape[1]
    W = width

    # Hoisted once per grid step (tiny blocks; keep broadcasts / casts out of
    # the per-image and per-tap loops -- JAX does not CSE broadcast_in_dim).
    w_all = w_ref[...].astype(compute_dtype)      # (9, Cout, Cin)
    masks = m_ref[...]                            # (9, HW)
    bias_f32 = b_ref[...].astype(jnp.float32)     # (Cout, 1)

    # Static per-tap shift in the flattened row-major plane.  Tap (kh, kw)
    # needs out[p] = x[p + off] with off = (kh-1)*W + (kw-1), and
    # pltpu.roll(x, s, axis)[p] == x[(p - s) mod HW]  =>  s = (-off) mod HW.
    taps = [(kh, kw) for kh in range(3) for kw in range(3)]
    shifts = [(-((kh - 1) * W + (kw - 1))) % hw for kh, kw in taps]

    def one_image(b):
        xb = x_ref[b]                             # (Cin, HW)
        acc = jnp.zeros((cout, hw), jnp.float32)
        for t, (kh, kw) in enumerate(taps):
            if kh == 1 and kw == 1:
                # Center tap: no shift, halo mask is all-ones -> skip both.
                xt = xb
            else:
                # Full-width XLU lane rotate + full-width mask multiply: no
                # partial/masked stores, wrap-around killed by the halo mask.
                xt = pltpu.roll(xb, shifts[t], 1) * masks[t:t + 1, :]
            xt = xt.astype(compute_dtype)
            # (Cout, Cin) @ (Cin, HW) -> (Cout, HW), f32 accumulation on MXU.
            acc = acc + jnp.dot(w_all[t], xt,
                                preferred_element_type=jnp.float32)
        out = jnp.maximum(acc + bias_f32, 0.0)    # bias + ReLU

        # Channel concat: two sublane-contiguous, lane-dense full-width stores.
        # TODO(synk): when chaining RDB layers, write into a preallocated
        # growing (N, Cin + L*Cout, HW) buffer via input_output_aliases instead
        # of re-writing the passthrough x on every layer.
        o_ref[b, 0:cin, :] = xb
        o_ref[b, cin:, :] = out.astype(o_ref.dtype)

    if nb == 1:
        one_image(0)                              # fully static indexing
    else:
        def body(b, carry):
            one_image(b)
            return carry
        lax.fori_loop(0, nb, body, 0)             # bounded live ranges for block_n > 1


def _pick_vmem_limit_bytes():
    """Generation-aware scoped-VMEM limit (leave double-buffering headroom;
    v7x only has 64 MiB physical VMEM, v5e/v6e have 128 MiB)."""
    cap = 128 * 1024 * 1024
    try:
        cap = int(getattr(pltpu.get_tpu_info(), "vmem_capacity_bytes", cap))
    except Exception:
        pass
    return max(16 * 1024 * 1024, min(96 * 1024 * 1024, (cap * 3) // 4))


def rdb_conv(x_nchw, weight, bias, *, block_n=1, compute_dtype=jnp.float32):
    """RdbConv forward: concat([x, relu(conv3x3(x) + b)], channel axis).

    x_nchw: (N, Cin, H, W)    float32
    weight: (Cout, Cin, 3, 3) float32  (PyTorch OIHW conv weight)
    bias:   (Cout,)
    compute_dtype: MXU operand dtype (jnp.bfloat16 recommended on v6e/v7x).
    returns (N, Cin+Cout, H, W)
    """
    N, Cin, H, W = x_nchw.shape
    Cout = weight.shape[0]
    assert weight.shape == (Cout, Cin, 3, 3), weight.shape
    assert N % block_n == 0, "block_n must divide the batch"
    HW = H * W
    # Best performance when HW is a multiple of 128 (lane width); correctness
    # does not depend on it.
    # TODO(synk): for large Cin / H*W (v7x: 64 MiB VMEM), add a grid axis over
    # row tiles with a 1-row halo so the per-step VMEM footprint stays bounded.

    # Free contiguous reshape: NCHW -> (N, C, H*W). No transpose, no pad.
    x_flat = x_nchw.reshape(N, Cin, HW)
    # OIHW -> (9, Cout, Cin): per-tap weight matrices, tap t = kh*3 + kw.
    w_taps = jnp.transpose(weight, (2, 3, 0, 1)).reshape(9, Cout, Cin)
    b_col = bias.reshape(Cout, 1)

    # Per-tap halo masks: tap (kh, kw) reads pixel (row+kh-1, col+kw-1); mask
    # out positions whose source pixel is outside the image.  This implements
    # the conv zero padding and also kills the roll wrap-around.
    idx = jnp.arange(HW, dtype=jnp.int32)
    row, col = idx // W, idx % W
    tap_masks = []
    for kh in range(3):
        for kw in range(3):
            m = jnp.ones((HW,), dtype=jnp.bool_)
            if kh == 0:
                m = m & (row != 0)
            if kh == 2:
                m = m & (row != H - 1)
            if kw == 0:
                m = m & (col != 0)
            if kw == 2:
                m = m & (col != W - 1)
            tap_masks.append(m)
    masks = jnp.stack(tap_masks).astype(x_nchw.dtype)      # (9, HW)

    kernel = functools.partial(_rdb_conv_kernel, width=W,
                               compute_dtype=compute_dtype)

    out_flat = pl.pallas_call(
        kernel,
        out_shape=jax.ShapeDtypeStruct((N, Cin + Cout, HW), x_nchw.dtype),
        grid_spec=pltpu.PrefetchScalarGridSpec(
            num_scalar_prefetch=0,
            grid=(N // block_n,),          # keep >= 2 steps so v7x uses both TCs
            in_specs=[
                pl.BlockSpec((block_n, Cin, HW), lambda n: (n, 0, 0)),
                pl.BlockSpec((9, Cout, Cin), lambda n: (0, 0, 0)),
                pl.BlockSpec((Cout, 1), lambda n: (0, 0)),
                pl.BlockSpec((9, HW), lambda n: (0, 0)),
            ],
            out_specs=pl.BlockSpec((block_n, Cin + Cout, HW),
                                   lambda n: (n, 0, 0)),
        ),
        compiler_params=pltpu.CompilerParams(
            dimension_semantics=("parallel",),      # batch-block axis -> megacore
            vmem_limit_bytes=_pick_vmem_limit_bytes(),
        ),
    )(x_flat, w_taps, b_col, masks)

    return out_flat.reshape(N, Cin + Cout, H, W)


def _reference(x_nchw, weight, bias):
    """Pure-JAX reference (lax conv), matching PyTorch semantics."""
    out = jax.lax.conv_general_dilated(
        x_nchw, weight,
        window_strides=(1, 1),
        padding=((1, 1), (1, 1)),
        dimension_numbers=("NCHW", "OIHW", "NCHW"),
    )
    out = jax.nn.relu(out + bias.reshape(1, -1, 1, 1))
    return jnp.concatenate([x_nchw, out], axis=1)


def _make_inputs(key, N, Cin, Cout, H, W):
    kx, kw, kb = jax.random.split(key, 3)
    x = jax.random.normal(kx, (N, Cin, H, W), dtype=jnp.float32)
    w = jax.random.normal(kw, (Cout, Cin, 3, 3), dtype=jnp.float32) / jnp.sqrt(9 * Cin)
    b = jax.random.normal(kb, (Cout,), dtype=jnp.float32) * 0.1
    return x, w, b


if __name__ == "__main__":
    # RdbConv(in_channels=4, grow_rate=8), 3x3 conv.
    # Config 1: batch=2, 16x16, f32 MXU operands (tight check), grid=(2,).
    x, w, b = _make_inputs(jax.random.PRNGKey(0), 2, 4, 8, 16, 16)
    out = jax.block_until_ready(rdb_conv(x, w, b, block_n=1))
    ref = jax.block_until_ready(_reference(x, w, b))
    assert out.shape == (2, 12, 16, 16), out.shape
    err = float(jnp.abs(out - ref).max())
    assert jnp.allclose(out, ref, atol=1e-4, rtol=1e-4), err

    # Config 2: batch=4 with block_n=2 (fori_loop batch path, grid=(2,)) and
    # bf16 MXU operands (v6e/v7x recommendation) with a loosened tolerance.
    x2, w2, b2 = _make_inputs(jax.random.PRNGKey(1), 4, 4, 8, 16, 16)
    out2 = jax.block_until_ready(
        rdb_conv(x2, w2, b2, block_n=2, compute_dtype=jnp.bfloat16))
    ref2 = jax.block_until_ready(_reference(x2, w2, b2))
    assert out2.shape == (4, 12, 16, 16), out2.shape
    err2 = float(jnp.abs(out2 - ref2).max())
    assert jnp.allclose(out2, ref2, atol=3e-2, rtol=3e-2), err2

    print("KERNEL_OK")
</pallas_src>

<mosaic_0001>
module attributes {stable_mosaic.version = 11 : i64} {
  func.func @_rdb_conv_kernel(%arg0: i32, %arg1: memref<1x4x256xf32, #tpu.memory_space<vmem>>, %arg2: memref<9x8x4xf32, #tpu.memory_space<vmem>>, %arg3: memref<8x1xf32, #tpu.memory_space<vmem>>, %arg4: memref<9x256xf32, #tpu.memory_space<vmem>>, %arg5: memref<1x12x256xf32, #tpu.memory_space<vmem>>) attributes {dimension_semantics = [#tpu.dimension_semantics<parallel>], iteration_bounds = array<i64: 2>, scalar_prefetch = 0 : i64, scratch_operands = 0 : i64, tpu.core_type = #tpu.core_type<tc>, window_params = [{transform_indices = @transform_0, window_bounds = array<i64: 1, 4, 256>}, {pipeline_mode = #tpu.pipeline_mode<synchronous>, transform_indices = @transform_1, window_bounds = array<i64: 9, 8, 4>}, {pipeline_mode = #tpu.pipeline_mode<synchronous>, transform_indices = @transform_2, window_bounds = array<i64: 8, 1>}, {pipeline_mode = #tpu.pipeline_mode<synchronous>, transform_indices = @transform_3, window_bounds = array<i64: 9, 256>}, {transform_indices = @transform_4, window_bounds = array<i64: 1, 12, 256>}]} {
    %c0 = arith.constant 0 : index
    %c0_0 = arith.constant 0 : index
    %c0_1 = arith.constant 0 : index
    %0 = vector.load %arg2[%c0, %c0_0, %c0_1] : memref<9x8x4xf32, #tpu.memory_space<vmem>>, vector<9x8x4xf32>
    %c0_2 = arith.constant 0 : index
    %c0_3 = arith.constant 0 : index
    %1 = vector.load %arg4[%c0_2, %c0_3] : memref<9x256xf32, #tpu.memory_space<vmem>>, vector<9x256xf32>
    %c0_4 = arith.constant 0 : index
    %c0_5 = arith.constant 0 : index
    %2 = vector.load %arg3[%c0_4, %c0_5] : memref<8x1xf32, #tpu.memory_space<vmem>>, vector<8x1xf32>
    %c0_6 = arith.constant 0 : index
    %c0_7 = arith.constant 0 : index
    %c0_8 = arith.constant 0 : index
    %3 = vector.load %arg1[%c0_6, %c0_7, %c0_8] : memref<1x4x256xf32, #tpu.memory_space<vmem>>, vector<1x4x256xf32>
    %4 = vector.shape_cast %3 : vector<1x4x256xf32> to vector<4x256xf32>
    %cst = arith.constant 0.000000e+00 : f32
    %5 = vector.broadcast %cst : f32 to vector<8x256xf32>
    %c17_i32 = arith.constant 17 : i32
    %6 = tpu.dynamic_rotate %4 by %c17_i32 dim 1 : vector<4x256xf32>, i32 -> vector<4x256xf32>
    %7 = vector.extract_strided_slice %1 {offsets = [0, 0], sizes = [1, 256], strides = [1, 1]} : vector<9x256xf32> to vector<1x256xf32>
    %8 = vector.broadcast %7 : vector<1x256xf32> to vector<4x256xf32>
    %9 = arith.mulf %6, %8 : vector<4x256xf32>
    %10 = vector.extract_strided_slice %0 {offsets = [0, 0, 0], sizes = [1, 8, 4], strides = [1, 1, 1]} : vector<9x8x4xf32> to vector<1x8x4xf32>
    %11 = vector.shape_cast %10 : vector<1x8x4xf32> to vector<8x4xf32>
    %cst_9 = arith.constant dense<0.000000e+00> : vector<8x256xf32>
    %12 = tpu.matmul %11, %9, %cst_9 {dimension_numbers = #tpu.dot_dimension_numbers<[1], [0], [0], [1], [0, 0, 1, 1], [], []>} : vector<8x4xf32>, vector<4x256xf32>, vector<8x256xf32> -> vector<8x256xf32>
    %13 = arith.addf %5, %12 : vector<8x256xf32>
    %c16_i32 = arith.constant 16 : i32
    %14 = tpu.dynamic_rotate %4 by %c16_i32 dim 1 : vector<4x256xf32>, i32 -> vector<4x256xf32>
    %15 = vector.extract_strided_slice %1 {offsets = [1, 0], sizes = [1, 256], strides = [1, 1]} : vector<9x256xf32> to vector<1x256xf32>
    %16 = vector.broadcast %15 : vector<1x256xf32> to vector<4x256xf32>
    %17 = arith.mulf %14, %16 : vector<4x256xf32>
    %18 = vector.extract_strided_slice %0 {offsets = [1, 0, 0], sizes = [1, 8, 4], strides = [1, 1, 1]} : vector<9x8x4xf32> to vector<1x8x4xf32>
    %19 = vector.shape_cast %18 : vector<1x8x4xf32> to vector<8x4xf32>
    %cst_10 = arith.constant dense<0.000000e+00> : vector<8x256xf32>
    %20 = tpu.matmul %19, %17, %cst_10 {dimension_numbers = #tpu.dot_dimension_numbers<[1], [0], [0], [1], [0, 0, 1, 1], [], []>} : vector<8x4xf32>, vector<4x256xf32>, vector<8x256xf32> -> vector<8x256xf32>
    %21 = arith.addf %13, %20 : vector<8x256xf32>
    %c15_i32 = arith.constant 15 : i32
    %22 = tpu.dynamic_rotate %4 by %c15_i32 dim 1 : vector<4x256xf32>, i32 -> vector<4x256xf32>
    %23 = vector.extract_strided_slice %1 {offsets = [2, 0], sizes = [1, 256], strides = [1, 1]} : vector<9x256xf32> to vector<1x256xf32>
    %24 = vector.broadcast %23 : vector<1x256xf32> to vector<4x256xf32>
    %25 = arith.mulf %22, %24 : vector<4x256xf32>
    %26 = vector.extract_strided_slice %0 {offsets = [2, 0, 0], sizes = [1, 8, 4], strides = [1, 1, 1]} : vector<9x8x4xf32> to vector<1x8x4xf32>
    %27 = vector.shape_cast %26 : vector<1x8x4xf32> to vector<8x4xf32>
    %cst_11 = arith.constant dense<0.000000e+00> : vector<8x256xf32>
    %28 = tpu.matmul %27, %25, %cst_11 {dimension_numbers = #tpu.dot_dimension_numbers<[1], [0], [0], [1], [0, 0, 1, 1], [], []>} : vector<8x4xf32>, vector<4x256xf32>, vector<8x256xf32> -> vector<8x256xf32>
    %29 = arith.addf %21, %28 : vector<8x256xf32>
    %c1_i32 = arith.constant 1 : i32
    %30 = tpu.dynamic_rotate %4 by %c1_i32 dim 1 : vector<4x256xf32>, i32 -> vector<4x256xf32>
    %31 = vector.extract_strided_slice %1 {offsets = [3, 0], sizes = [1, 256], strides = [1, 1]} : vector<9x256xf32> to vector<1x256xf32>
    %32 = vector.broadcast %31 : vector<1x256xf32> to vector<4x256xf32>
    %33 = arith.mulf %30, %32 : vector<4x256xf32>
    %34 = vector.extract_strided_slice %0 {offsets = [3, 0, 0], sizes = [1, 8, 4], strides = [1, 1, 1]} : vector<9x8x4xf32> to vector<1x8x4xf32>
    %35 = vector.shape_cast %34 : vector<1x8x4xf32> to vector<8x4xf32>
    %cst_12 = arith.constant dense<0.000000e+00> : vector<8x256xf32>
    %36 = tpu.matmul %35, %33, %cst_12 {dimension_numbers = #tpu.dot_dimension_numbers<[1], [0], [0], [1], [0, 0, 1, 1], [], []>} : vector<8x4xf32>, vector<4x256xf32>, vector<8x256xf32> -> vector<8x256xf32>
    %37 = arith.addf %29, %36 : vector<8x256xf32>
    %38 = vector.extract_strided_slice %0 {offsets = [4, 0, 0], sizes = [1, 8, 4], strides = [1, 1, 1]} : vector<9x8x4xf32> to vector<1x8x4xf32>
    %39 = vector.shape_cast %38 : vector<1x8x4xf32> to vector<8x4xf32>
    %cst_13 = arith.constant dense<0.000000e+00> : vector<8x256xf32>
    %40 = tpu.matmul %39, %4, %cst_13 {dimension_numbers = #tpu.dot_dimension_numbers<[1], [0], [0], [1], [0, 0, 1, 1], [], []>} : vector<8x4xf32>, vector<4x256xf32>, vector<8x256xf32> -> vector<8x256xf32>
    %41 = arith.addf %37, %40 : vector<8x256xf32>
    %c255_i32 = arith.constant 255 : i32
    %42 = tpu.dynamic_rotate %4 by %c255_i32 dim 1 : vector<4x256xf32>, i32 -> vector<4x256xf32>
    %43 = vector.extract_strided_slice %1 {offsets = [5, 0], sizes = [1, 256], strides = [1, 1]} : vector<9x256xf32> to vector<1x256xf32>
    %44 = vector.broadcast %43 : vector<1x256xf32> to vector<4x256xf32>
    %45 = arith.mulf %42, %44 : vector<4x256xf32>
    %46 = vector.extract_strided_slice %0 {offsets = [5, 0, 0], sizes = [1, 8, 4], strides = [1, 1, 1]} : vector<9x8x4xf32> to vector<1x8x4xf32>
    %47 = vector.shape_cast %46 : vector<1x8x4xf32> to vector<8x4xf32>
    %cst_14 = arith.constant dense<0.000000e+00> : vector<8x256xf32>
    %48 = tpu.matmul %47, %45, %cst_14 {dimension_numbers = #tpu.dot_dimension_numbers<[1], [0], [0], [1], [0, 0, 1, 1], [], []>} : vector<8x4xf32>, vector<4x256xf32>, vector<8x256xf32> -> vector<8x256xf32>
    %49 = arith.addf %41, %48 : vector<8x256xf32>
    %c241_i32 = arith.constant 241 : i32
    %50 = tpu.dynamic_rotate %4 by %c241_i32 dim 1 : vector<4x256xf32>, i32 -> vector<4x256xf32>
    %51 = vector.extract_strided_slice %1 {offsets = [6, 0], sizes = [1, 256], strides = [1, 1]} : vector<9x256xf32> to vector<1x256xf32>
    %52 = vector.broadcast %51 : vector<1x256xf32> to vector<4x256xf32>
    %53 = arith.mulf %50, %52 : vector<4x256xf32>
    %54 = vector.extract_strided_slice %0 {offsets = [6, 0, 0], sizes = [1, 8, 4], strides = [1, 1, 1]} : vector<9x8x4xf32> to vector<1x8x4xf32>
    %55 = vector.shape_cast %54 : vector<1x8x4xf32> to vector<8x4xf32>
    %cst_15 = arith.constant dense<0.000000e+00> : vector<8x256xf32>
    %56 = tpu.matmul %55, %53, %cst_15 {dimension_numbers = #tpu.dot_dimension_numbers<[1], [0], [0], [1], [0, 0, 1, 1], [], []>} : vector<8x4xf32>, vector<4x256xf32>, vector<8x256xf32> -> vector<8x256xf32>
    %57 = arith.addf %49, %56 : vector<8x256xf32>
    %c240_i32 = arith.constant 240 : i32
    %58 = tpu.dynamic_rotate %4 by %c240_i32 dim 1 : vector<4x256xf32>, i32 -> vector<4x256xf32>
    %59 = vector.extract_strided_slice %1 {offsets = [7, 0], sizes = [1, 256], strides = [1, 1]} : vector<9x256xf32> to vector<1x256xf32>
    %60 = vector.broadcast %59 : vector<1x256xf32> to vector<4x256xf32>
    %61 = arith.mulf %58, %60 : vector<4x256xf32>
    %62 = vector.extract_strided_slice %0 {offsets = [7, 0, 0], sizes = [1, 8, 4], strides = [1, 1, 1]} : vector<9x8x4xf32> to vector<1x8x4xf32>
    %63 = vector.shape_cast %62 : vector<1x8x4xf32> to vector<8x4xf32>
    %cst_16 = arith.constant dense<0.000000e+00> : vector<8x256xf32>
    %64 = tpu.matmul %63, %61, %cst_16 {dimension_numbers = #tpu.dot_dimension_numbers<[1], [0], [0], [1], [0, 0, 1, 1], [], []>} : vector<8x4xf32>, vector<4x256xf32>, vector<8x256xf32> -> vector<8x256xf32>
    %65 = arith.addf %57, %64 : vector<8x256xf32>
    %c239_i32 = arith.constant 239 : i32
    %66 = tpu.dynamic_rotate %4 by %c239_i32 dim 1 : vector<4x256xf32>, i32 -> vector<4x256xf32>
    %67 = vector.extract_strided_slice %1 {offsets = [8, 0], sizes = [1, 256], strides = [1, 1]} : vector<9x256xf32> to vector<1x256xf32>
    %68 = vector.broadcast %67 : vector<1x256xf32> to vector<4x256xf32>
    %69 = arith.mulf %66, %68 : vector<4x256xf32>
    %70 = vector.extract_strided_slice %0 {offsets = [8, 0, 0], sizes = [1, 8, 4], strides = [1, 1, 1]} : vector<9x8x4xf32> to vector<1x8x4xf32>
    %71 = vector.shape_cast %70 : vector<1x8x4xf32> to vector<8x4xf32>
    %cst_17 = arith.constant dense<0.000000e+00> : vector<8x256xf32>
    %72 = tpu.matmul %71, %69, %cst_17 {dimension_numbers = #tpu.dot_dimension_numbers<[1], [0], [0], [1], [0, 0, 1, 1], [], []>} : vector<8x4xf32>, vector<4x256xf32>, vector<8x256xf32> -> vector<8x256xf32>
    %73 = arith.addf %65, %72 : vector<8x256xf32>
    %74 = vector.broadcast %2 : vector<8x1xf32> to vector<8x256xf32>
    %75 = arith.addf %73, %74 : vector<8x256xf32>
    %cst_18 = arith.constant 0.000000e+00 : f32
    %76 = vector.broadcast %cst_18 : f32 to vector<8x256xf32>
    %77 = arith.maximumf %75, %76 : vector<8x256xf32>
    %c0_19 = arith.constant 0 : index
    %c0_20 = arith.constant 0 : index
    %c0_21 = arith.constant 0 : index
    %78 = vector.load %arg5[%c0_19, %c0_20, %c0_21] : memref<1x12x256xf32, #tpu.memory_space<vmem>>, vector<1x4x256xf32>
    %79 = vector.shape_cast %78 : vector<1x4x256xf32> to vector<4x256xf32>
    %80 = vector.shape_cast %4 : vector<4x256xf32> to vector<1x4x256xf32>
    tpu.vector_store %arg5[%c0_19, %c0_20, %c0_21], %80 {strides = array<i32>} : memref<1x12x256xf32, #tpu.memory_space<vmem>>, vector<1x4x256xf32>,
    %c0_22 = arith.constant 0 : index
    %c4 = arith.constant 4 : index
    %c0_23 = arith.constant 0 : index
    %81 = vector.load %arg5[%c0_22, %c4, %c0_23] : memref<1x12x256xf32, #tpu.memory_space<vmem>>, vector<1x8x256xf32>
    %82 = vector.shape_cast %81 : vector<1x8x256xf32> to vector<8x256xf32>
    %83 = vector.shape_cast %77 : vector<8x256xf32> to vector<1x8x256xf32>
    tpu.vector_store %arg5[%c0_22, %c4, %c0_23], %83 {strides = array<i32>} : memref<1x12x256xf32, #tpu.memory_space<vmem>>, vector<1x8x256xf32>,
    return
  }
  func.func @transform_0(%arg0: i32) -> (i32, i32, i32) {
    %c0_i32 = arith.constant 0 : i32
    %c0_i32_0 = arith.constant 0 : i32
    %c0_i32_1 = arith.constant 0 : i32
    return %arg0, %c0_i32, %c0_i32_0 : i32, i32, i32
  }
  func.func @transform_1(%arg0: i32) -> (i32, i32, i32) {
    %c0_i32 = arith.constant 0 : i32
    %c0_i32_0 = arith.constant 0 : i32
    %c0_i32_1 = arith.constant 0 : i32
    %c0_i32_2 = arith.constant 0 : i32
    return %c0_i32, %c0_i32_0, %c0_i32_1 : i32, i32, i32
  }
  func.func @transform_2(%arg0: i32) -> (i32, i32) {
    %c0_i32 = arith.constant 0 : i32
    %c0_i32_0 = arith.constant 0 : i32
    %c0_i32_1 = arith.constant 0 : i32
    return %c0_i32, %c0_i32_0 : i32, i32
  }
  func.func @transform_3(%arg0: i32) -> (i32, i32) {
    %c0_i32 = arith.constant 0 : i32
    %c0_i32_0 = arith.constant 0 : i32
    %c0_i32_1 = arith.constant 0 : i32
    return %c0_i32, %c0_i32_0 : i32, i32
  }
  func.func @transform_4(%arg0: i32) -> (i32, i32, i32) {
    %c0_i32 = arith.constant 0 : i32
    %c0_i32_0 = arith.constant 0 : i32
    %c0_i32_1 = arith.constant 0 : i32
    return %arg0, %c0_i32, %c0_i32_0 : i32, i32, i32
  }
}

</mosaic_0001>

<bundles_post_ra>
// kernel: tpu_custom_call.1
= control target key start
LH: loop header
LB: loop body
LE: loop exit
PB: predicated region body
PF: predicated region fallthrough
CT: control target
= control target key end

     0   :  { %9 = vsyncpa [#allocation3], 0  ;;  %s2042_s0 = inlined_call_operand.hbm [shape: f32[2,4,256], index: 0, kind: input, shape index: {}]   ;;  %s2043_s1 = inlined_call_operand.hbm [shape: f32[9,8,4], index: 1, kind: input, shape index: {}]   ;;  %s2044_s2 = inlined_call_operand.hbm [shape: f32[8,1], index: 2, kind: input, shape index: {}]   ;;  %s2045_s3 = inlined_call_operand.hbm [shape: f32[9,256], index: 3, kind: input, shape index: {}]   ;;  %s2046_s4 = inlined_call_operand.hbm [shape: f32[2,12,256], index: 4, kind: output, shape index: {}]  }
   0x1   :  { %11 = vsyncpa [#allocation3 + $0x1], 0 }
   0x2   :  { %12 = vsyncpa [#allocation6], 0 }
   0x3   :  { %13 = vsyncpa [#allocation9], 0 }
   0x4   :  { %14 = vsyncpa [#allocation4], 0 }
   0x5   :  { %16 = vsyncpa [#allocation4 + $0x1], 0  ;;  %s1679_s15 = smov 0   ;;  %s1681_s16 = smov 0  }
   0x6   :  { %s1683_s17 = smov 0   ;;  %s1685_s18 = smov 0  }
   0x7 LB: > { %s1700_s19 = sadd.s32 4294967295, %s1632_s18   ;;  %s1283_s20 = sadd.s32 4294967294, %s1632_s18   ;;  %s1632_s18 = sphi %s1685_s18, %s2069_s18   ;;  %s1628_s17 = sphi %s1683_s17, %s2068_s17   ;;  %s1624_s16 = sphi %s1681_s16, %s2067_s16   ;;  %s1620_s15 = sphi %s1679_s15, %s2066_s15  }
   0x8   : > { %p42_p0 = scmp.ne.s32.totalorder %s1624_s16, %s1620_s15  ;;  %p2047_p1 = scmp.eq.s32.totalorder %s1700_s19, 0 }
   0x9   : > { %p135_p3 = scmp.eq.s32.totalorder %s1283_s20, 1  ;;  %p1284_p5 = scmp.ge.s32.totalorder %s1632_s18, 1 }
   0xa   : > { %p1709_p4 = por %p2047_p1, %p42_p0  ;;  %p142_p7 = scmp.lt.s32.totalorder %s1632_s18, 3 }
   0xb   : > { %p1714_p6 = por %p135_p3, %p42_p0  ;;  %s1634_s24 = smov [#allocation5]  }
   0xc   : > { %s2050_s21 = scalar_select %p1709_p4, 1, 0 }
   0xd   : > { %s2051_s22 = scalar_select %p1714_p6, 1, 0 }
   0xe   : > { %p1719_p8 = pnand %p1284_p5, %p142_p7  ;;  %s154_s25 = sshll.u32 %s1634_s24, 4  ;;  %s1723_s25 = int_to_ptr.vmem [resolvable:$true] %s154_s25 }
   0xf   : > { %s1635_s27 = smov [#allocation7]   ;;  %s1636_s29 = smov [#allocation8]  }
  0x10   : > { %s2052_s23 = scalar_select %p1719_p8, 1, 0 }
  0x11   : > { %p1366_p9 = pneg %p1719_p8  ;;  %s168_s28 = sshll.u32 %s1635_s27, 4  ;;  %s1734_s28 = int_to_ptr.vmem [resolvable:$true] %s168_s28 }
  0x12   : > { %s1736_s30 = sshll.u32 %s1636_s29, 4  ;;  %s1444_s7 = scalar_lea.hbm %s2043_s1, 1152  ;;  %s179_s30 = int_to_ptr.vmem [resolvable:$true] %s1736_s30 }
  0x13   : > { %p1730_p11 = pnand %p1366_p9, %p2047_p1  ;;  %p1445_p12 = scmp.ne.s32.totalorder %s2043_s1, %s1444_s7 }
  0x14   : > { %p1451_p5 = scmp.lt.u32.totalorder %s1444_s7, %s2043_s1 }
  0x15   : > { %p1746_p13 = pneg %p1730_p11 }
  0x17   : > { %p1447_p0 = pnand %p1746_p13, %p1445_p12 }
  0x19   : > { %p1448_p3 = pneg %p1447_p0 }
  0x1b   : > { %p1453_p7 = pnand %p1451_p5, %p1448_p3 }
  0x1d   : > { %1456 = shalt.err (!%p1453_p7)
}
  0x1e   : > { %s1457_s13 = scalar_lea.vmem %s1723_s25, 1152  ;;  %p1465_p2 = scmp.lt.s32.totalorder %s1723_s25, %s1723_s25 }
  0x1f   : > { %p1458_p9 = scmp.ne.s32.totalorder %s1723_s25, %s1457_s13  ;;  %p1466_p6 = scmp.lt.s32.totalorder %s1457_s13, %s1457_s13 }
  0x21   : > { %p1460_p10 = pnand %p1458_p9, %p1746_p13  ;;  %p1467_p12 = por %p1466_p6, %p1465_p2 }
  0x23   : > { %p1461_p1 = pneg %p1460_p10 }
  0x25   : > { %p1468_p0 = pnand %p1467_p12, %p1461_p1 }
  0x27   : > { %1471 = shalt.err (!%p1468_p0)
}
  0x28   : > { %s1637_s14 = smov 128   ;;  %s1638_s20 = smov 8  }
  0x29   : > { %1369 = dma.hbm_to_vmem [thread:$0]  (!%p1730_p11), %s2043_s1, 1152, %s1723_s25, [#allocation6], %s1637_s14, %s1637_s14, %s1638_s20  }
  0x2a   : > { %s1472_s6 = scalar_lea.hbm %s2044_s2, 128 }
  0x2b   : > { %p1473_p2 = scmp.ne.s32.totalorder %s2044_s2, %s1472_s6  ;;  %p1479_p10 = scmp.lt.u32.totalorder %s1472_s6, %s2044_s2 }
  0x2d   : > { %p1475_p1 = pnand %p1473_p2, %p1746_p13 }
  0x2f   : > { %p1476_p6 = pneg %p1475_p1 }
  0x31   : > { %p1481_p3 = pnand %p1479_p10, %p1476_p6 }
  0x33   : > { %1484 = shalt.err (!%p1481_p3)
}
  0x34   : > { %s1485_s25 = scalar_lea.vmem %s1734_s28, 128  ;;  %p1493_p12 = scmp.lt.s32.totalorder %s1734_s28, %s1734_s28 }
  0x35   : > { %p1486_p5 = scmp.ne.s32.totalorder %s1734_s28, %s1485_s25  ;;  %p1494_p0 = scmp.lt.s32.totalorder %s1485_s25, %s1485_s25 }
  0x37   : > { %p1488_p7 = pnand %p1486_p5, %p1746_p13  ;;  %p1495_p2 = por %p1494_p0, %p1493_p12 }
  0x39   : > { %p1489_p9 = pneg %p1488_p7 }
  0x3b   : > { %p1496_p1 = pnand %p1495_p2, %p1489_p9 }
  0x3d   : > { %1499 = shalt.err (!%p1496_p1)
}
  0x3e   : > { %1372 = dma.hbm_to_vmem [thread:$0]  (!%p1730_p11), %s2044_s2, 128, %s1734_s28, [#allocation6]  }
  0x3f   : > { %s1500_s24 = scalar_lea.hbm %s2045_s3, 512 }
  0x40   : > { %p1501_p6 = scmp.ne.s32.totalorder %s2045_s3, %s1500_s24  ;;  %p1507_p5 = scmp.lt.u32.totalorder %s1500_s24, %s2045_s3 }
  0x42   : > { %p1503_p10 = pnand %p1501_p6, %p1746_p13 }
  0x44   : > { %p1504_p3 = pneg %p1503_p10 }
  0x46   : > { %p1509_p7 = pnand %p1507_p5, %p1504_p3 }
  0x48   : > { %1512 = shalt.err (!%p1509_p7)
}
  0x49   : > { %s1513_s7 = scalar_lea.vmem %s179_s30, 512  ;;  %p1521_p2 = scmp.lt.s32.totalorder %s179_s30, %s179_s30 }
  0x4a   : > { %p1514_p9 = scmp.ne.s32.totalorder %s179_s30, %s1513_s7  ;;  %p1522_p1 = scmp.lt.s32.totalorder %s1513_s7, %s1513_s7 }
  0x4c   : > { %p1516_p12 = pnand %p1514_p9, %p1746_p13  ;;  %p1523_p4 = por %p1522_p1, %p1521_p2 }
  0x4e   : > { %p1517_p0 = pneg %p1516_p12 }
  0x50   : > { %p1524_p8 = pnand %p1523_p4, %p1517_p0 }
  0x52   : > { %1527 = shalt.err (!%p1524_p8)
}
  0x53   : > { %s1639_s28 = smov 256   ;;  %s1640_s10 = smov 16  }
  0x54   : > { %1375 = dma.hbm_to_vmem [thread:$0]  (!%p1730_p11), %s2045_s3, 512, %s179_s30, [#allocation9], %s1639_s28, %s1639_s28, %s1640_s10  }
  0x55   : > { %s1810_s11 = sadd.s32 1, %s1632_s18   ;;  %s29_s12 = sadd.s32 1, %s1628_s17 }
  0x56   : > { %s26_s25 = ssub.s32 %s1632_s18, %s1810_s11  ;;  %p36_p8 = scmp.ne.s32.totalorder %s1628_s17, %s1624_s16 }
  0x57   : > { %p27_p4 = scmp.eq.s32.totalorder %s26_s25, 0  ;;  %p37_p13 = scmp.eq.s32.totalorder %s1632_s18, 0 }
  0x58   : > { %p1387_p6 = scmp.lt.s32.totalorder %s1632_s18, 2  ;;  %p2055_p3 = scmp.eq.s32.totalorder %s1700_s19, 1 }
  0x59   : > { %s1820_s13 = scalar_select %p27_p4, %s1628_s17, %s29_s12  }
  0x5a   : > { %p38_p10 = por %p37_p13, %p36_p8  ;;  %p1824_p5 = por %p2055_p3, %p36_p8 }
  0x5b   : > { %s192_s26 = sand.u32 1, %s1628_s17   ;;  %s1332_s20 = sshll.u32 %s1632_s18, 7 }
  0x5c   : > { %s1289_s30 = sshll.u32 %s192_s26, 3  ;;  %s1833_s29 = scalar_lea.hbm %s2042_s0, %s1332_s20 }
  0x5d   : > { %s196_s5 = scalar_lea.vmem [#allocation2], %s1289_s30  ;;  %p1835_p11 = pnand %p1387_p6, %p38_p10 }
  0x5e   : > { %s204_s6 = sshll.u32 %s196_s5, 4  ;;  %s193_s28 = scalar_lea.sflag [#allocation3], %s192_s26  ;;  %s1839_s6 = int_to_ptr.vmem [resolvable:$true] %s204_s6 }
  0x5f   : > { %s1528_s10 = scalar_lea.hbm %s1833_s29, 128  ;;  %p1530_p9 = pneg %p1835_p11 }
  0x60   : > { %p1529_p7 = scmp.ne.s32.totalorder %s1833_s29, %s1528_s10  ;;  %s1533_s25 = scalar_lea.hbm %s2042_s0, 256 }
  0x61   : > { %p1534_p2 = scmp.lt.u32.totalorder %s1833_s29, %s2042_s0  ;;  %p1535_p1 = scmp.lt.u32.totalorder %s1533_s25, %s1528_s10 }
  0x62   : > { %p1531_p12 = pnand %p1530_p9, %p1529_p7  ;;  %p1537_p8 = scmp.lt.u32.totalorder %s1528_s10, %s1833_s29 }
  0x63   : > { %p1536_p4 = por %p1535_p1, %p1534_p2 }
  0x64   : > { %p1532_p0 = pneg %p1531_p12 }
  0x65   : > { %p1538_p13 = por %p1537_p8, %p1536_p4 }
  0x67   : > { %p1539_p6 = pnand %p1538_p13, %p1532_p0 }
  0x69   : > { %1542 = shalt.err (!%p1539_p6)
}
  0x6a   : > { %s1543_s26 = scalar_lea.vmem %s1839_s6, 128  ;;  %s1641_s30 = smov [#allocation2]  }
  0x6b   : > { %p1544_p10 = scmp.ne.s32.totalorder %s1839_s6, %s1543_s26  ;;  %s1548_s24 = sshll.u32 %s1641_s30, 4  ;;  %s1549_s24 = int_to_ptr.vmem [resolvable:$false] %s1548_s24 }
  0x6c   : > { %s1550_s27 = scalar_lea.vmem %s1549_s24, 256  ;;  %p1551_p12 = scmp.lt.s32.totalorder %s1839_s6, %s1549_s24 }
  0x6d   : > { %p1546_p3 = pnand %p1544_p10, %p1530_p9  ;;  %p1552_p2 = scmp.lt.s32.totalorder %s1550_s27, %s1543_s26 }
  0x6f   : > { %p1547_p7 = pneg %p1546_p3  ;;  %p1553_p1 = por %p1552_p2, %p1551_p12 }
  0x71   : > { %p1554_p4 = pnand %p1553_p1, %p1547_p7 }
  0x73   : > { %1557 = shalt.err (!%p1554_p4)
}
  0x74   : > { %1379 = dma.hbm_to_vmem [thread:$0]  (!%p1835_p11), %s1833_s29, 128, %s1839_s6, %s193_s28  }
  0x75   : > { %p2058_p0 = scmp.ne.s32.totalorder %s2052_s23, 0 }
  0x76   : > { %s1869_s5 = sand.u32 (!%p2058_p0), 1, %s1624_s16   ;;  %p2059_p9 = scmp.ne.s32.totalorder (!%p2058_p0), %s2050_s21, 0 }
  0x77   : > { %213 = sbr.rel (%p2058_p0) target bundleno = 519 (0x207), region = 36  ;;  %s1293_s10 = sshll.u32 (!%p2058_p0), %s1869_s5, 3 }
  0x78   : > { %s216_s8 = scalar_lea.sflag (!%p2058_p0), [#allocation3], %s1869_s5  ;;  %s219_s9 = scalar_lea.vmem (!%p2058_p0), [#allocation2], %s1293_s10 }
  0x7e   : > { %1603 = dma.done.wait (%p2059_p9), %s216_s8, 128  }
  0x7f   : > { %1605 = vsyncadd (%p2059_p9), %s216_s8, 4294967168  ;;  %p2060_p8 = scmp.eq.s32.totalorder %s1700_s19, 0 }
  0x81   : > { %1607 = dma.done.wait (%p2060_p8), [#allocation6], 1280   ;;  %p2061_p11 = pmov %p2060_p8 }
  0x82   : > { %p2062_p13 = pmov %p2060_p8 }
  0x83   : > { %1609 = vsyncadd (%p2061_p11), [#allocation6], 4294966016 }
  0x84   : > { %1611 = dma.done.wait (%p2062_p13), [#allocation9], 512   ;;  %p2063_p6 = pmov %p2060_p8 }
  0x85   : > { %v1642_v0 = vmov 0.0   ;;  %v1887_v1 = vld [vmem:[%s219_s9] sm:$0xff]  ;;  %vm314_vm0 = vcmask 1043456   ;;  %s1643_s21 = smov 127   ;;  %s1644_s23 = smov 16   ;;  %v260_v3 = vld [vmem:[#allocation5 + $0x20] sm:$0xff]  ;;  %v278_v6 = vlaneseq }
  0x86   : > { %1613 = vsyncadd (%p2063_p6), [#allocation9], 4294966784  ;;  %741 = vmatprep.mubr.f32.mxu0 %v1642_v0  ;;  %385 = vmatprep.mubr.f32.mxu1 %v1642_v0  ;;  %v1894_v2 = vcombine.high %v1887_v1, %v1887_v1  ;;  %vm310_vm1 = vcmask 31744   ;;  %s1645_s29 = smov 17   ;;  %s1646_s6 = smov 113   ;;  %v1649_v4 = vmov 0  }
  0x87   : > { %750 = vrot.lane.b32.xlu1 %v1887_v1, %s1643_s21  ;;  %293 = vrot.lane.b32.xlu0 %v1887_v1, %s1644_s23  ;;  %s1647_s7 = smov 15   ;;  %s1648_s28 = smov 112   ;;  %v269_v5 = vld [vmem:[#allocation7] sm:$0xff]  ;;  %v1917_v7 = vshrl.u32 %v278_v6, 7  ;;  %v1919_v8 = vand.u32 127, %v278_v6  ;;  %v1923_v11 = vld [vmem:[#allocation8] sm:$0xff] }
  0x88   : > { %1310 = vmatprep.subr.msk.mxu0 %vm314_vm0, %v1894_v2  ;;  %1442 = vset.pattern.permute.xlu0 %v1649_v4  ;;  %s1650_s25 = smov 1   ;;  %s1651_s12 = smov 111   ;;  %v1925_v12 = vld [vmem:[#allocation8 + $0x8] sm:$0xff]  ;;  %v257_v33 = vld [vmem:[#allocation5 + $0x8] sm:$0xff]  ;;  %v256_v53 = vld [vmem:[#allocation5] sm:$0xff] }
  0x89   : > { %1311 = vmatpush1.msk.msra.mxu0 %vm314_vm0, %v1887_v1  ;;  %v759_v9 = vsub.s32 5, %v1917_v7  ;;  %v302_v10 = vsub.s32 1, %v1917_v7  ;;  %v285_v15 = vsub.s32 0, %v1917_v7  ;;  %vm754_vm2 = vcmp.lt.s32.totalorder %v1919_v8, 127  ;;  %v261_v34 = vld [vmem:[#allocation5 + $0x28] sm:$0xff]  ;;  %v262_v54 = vld [vmem:[#allocation5 + $0x30] sm:$0xff] }
  0x8a   : > { %1312 = vmatmul.mubr.msk.f32.vlgmr.msra.gmra.mrb[0].mxu0 %vm310_vm1, %v260_v3  ;;  %vm297_vm3 = vcmp.lt.s32.totalorder %v1919_v8, 16  ;;  %vm280_vm4 = vcmp.lt.s32.totalorder %v1919_v8, 17  ;;  %v858_v24 = vsub.s32 6, %v1917_v7  ;;  %vm853_vm5 = vcmp.lt.s32.totalorder %v1919_v8, 113  ;;  %s1297_s20 = sshll.u32 %s1869_s5, 5  ;;  %s1333_s24 = sshll.u32 %s1700_s19, 9 }
  0x8b   : > { %752 = vrot.lane.b32.xlu1 %v1894_v2, %s1643_s21  ;;  %295 = vrot.lane.b32.xlu0 %v1894_v2, %s1644_s23  ;;  %v760_v16 = vrot.slane %v1923_v11, %v759_v9  ;;  %v764_v17 = vrot.slane %v1925_v12, %v759_v9  ;;  %v303_v18 = vrot.slane %v1923_v11, %v302_v10  ;;  %v481_v43 = vsub.s32 2, %v1917_v7  ;;  %s255_s26 = scalar_lea.vmem [#allocation10], %s1297_s20  ;;  %s1997_s8 = scalar_lea.hbm %s2046_s4, %s1333_s24 }
  0x8c   : > { %840 = vmatprep.mubr.f32.mxu0 %v1642_v0  ;;  %v307_v19 = vrot.slane %v1925_v12, %v302_v10  ;;  %v286_v22 = vrot.slane %v1923_v11, %v285_v15  ;;  %v290_v23 = vrot.slane %v1925_v12, %v285_v15  ;;  %v859_v39 = vrot.slane %v1923_v11, %v858_v24  ;;  %v263_v15 = vld [vmem:[#allocation5 + $0x38] sm:$0xff]  ;;  %s1181_s30 = sshll.u32 %s255_s26, 4  ;;  %s1168_s9 = scalar_lea.sflag [#allocation4], %s1869_s5  ;;  %s1992_s30 = int_to_ptr.vmem [resolvable:$true] %s1181_s30 }
  0x8d   : > { %v863_v42 = vrot.slane %v1925_v12, %v858_v24  ;;  %vm476_vm6 = vcmp.lt.s32.totalorder %v1919_v8, 15  ;;  %v957_v48 = vsub.s32 7, %v1917_v7  ;;  %v482_v51 = vrot.slane %v1923_v11, %v481_v43  ;;  %1155 = vst [vmem:[%s255_s26] sm:$0xf] %v1887_v1  ;;  %1156 = vst [vmem:[%s255_s26 + $0x8] sm:$0xf] %v1894_v2  ;;  %s1558_s21 = scalar_lea.vmem %s1992_s30, 512 }
  0x8e   : > { %v486_v52 = vrot.slane %v1925_v12, %v481_v43  ;;  %vm952_vm7 = vcmp.lt.s32.totalorder %v1919_v8, 112  ;;  %v580_v63 = vsub.s32 3, %v1917_v7  ;;  %vm575_vm8 = vcmp.lt.s32.totalorder %v1919_v8, 1  ;;  %p1559_p10 = scmp.ne.s32.totalorder %s1992_s30, %s1558_s21  ;;  %s1652_s19 = smov [#allocation10]  }
  0x8f   : > { %276 = vrot.lane.b32.xlu1 %v1894_v2, %s1645_s29  ;;  %274 = vrot.lane.b32.xlu0 %v1887_v1, %s1645_s29  ;;  %v958_v59 = vrot.slane %v1923_v11, %v957_v48  ;;  %v962_v62 = vrot.slane %v1925_v12, %v957_v48  ;;  %vm1051_vm9 = vcmp.lt.s32.totalorder %v1919_v8, 111  ;;  %s1562_s29 = sshll.u32 %s1652_s19, 4  ;;  %s1563_s29 = int_to_ptr.vmem [resolvable:$false] %s1562_s29 }
  0x90   : > { %v585_v7 = vrot.slane %v1925_v12, %v580_v63  ;;  %v1323_v12 = vld [vmem:[#allocation8 + $0x18] ss:$0 sm:$0xff]  ;;  %p1560_p3 = pnand %p1559_p10, %p1824_p5  ;;  %p1565_p12 = scmp.lt.s32.totalorder %s1992_s30, %s1563_s29 }
  0x92   : > { %p1561_p7 = pneg %p1560_p3 }
  0x93   : > { %851 = vrot.lane.b32.xlu1 %v1894_v2, %s1646_s6  ;;  %849 = vrot.lane.b32.xlu0 %v1887_v1, %s1646_s6  ;;  %s1564_s6 = scalar_lea.vmem %s1563_s29, 1024 }
  0x94   : > { %p1566_p2 = scmp.lt.s32.totalorder %s1564_s6, %s1558_s21 }
  0x96   : > { %p1567_p1 = por %p1566_p2, %p1565_p12 }
  0x97   : > { %474 = vrot.lane.b32.xlu1 %v1894_v2, %s1647_s7  ;;  %472 = vrot.lane.b32.xlu0 %v1887_v1, %s1647_s7 }
  0x98   : > { %p1568_p4 = pnand %p1567_p1, %p1561_p7 }
  0x9b   : > { %950 = vrot.lane.b32.xlu1 %v1894_v2, %s1648_s28  ;;  %948 = vrot.lane.b32.xlu0 %v1887_v1, %s1648_s28 }
  0x9f   : > { %573 = vrot.lane.b32.xlu1 %v1894_v2, %s1650_s25  ;;  %571 = vrot.lane.b32.xlu0 %v1887_v1, %s1650_s25 }
  0xa3   : > { %1049 = vrot.lane.b32.xlu1 %v1894_v2, %s1651_s12  ;;  %1047 = vrot.lane.b32.xlu0 %v1887_v1, %s1651_s12 }
  0xa7   : > { %1148 = vperm.xlu0 %1442, %v269_v5  }
  0xf9   : > { %v751_v13 = vpop.permute.xlu1 %750  ;;  %v294_v14 = vpop.permute.xlu0 %293 }
  0xfd   : > { %v753_v20 = vpop.permute.xlu1 %752  ;;  %v296_v21 = vpop.permute.xlu0 %295 }
  0xfe   : > { %v755_v25 = vsel %vm754_vm2, %v751_v13, %v753_v20  ;;  %v756_v26 = vsel %vm754_vm2, %v753_v20, %v751_v13  ;;  %v298_v27 = vsel %vm297_vm3, %v294_v14, %v296_v21  ;;  %v299_v28 = vsel %vm297_vm3, %v296_v21, %v294_v14  ;;  %v258_v14 = vld [vmem:[#allocation5 + $0x10] sm:$0xff] }
  0xff   : > { %v765_v29 = vmul.f32 %v760_v16, %v755_v25  ;;  %v766_v30 = vmul.f32 %v764_v17, %v756_v26  ;;  %v308_v31 = vmul.f32 %v303_v18, %v299_v28  ;;  %v309_v32 = vmul.f32 %v307_v19, %v298_v27  ;;  %v259_v28 = vld [vmem:[#allocation5 + $0x18] sm:$0xff] }
 0x100   : > { %v581_v13 = vrot.slane %v1923_v11, %v580_v63  ;;  %v1322_v11 = vld [vmem:[#allocation8 + $0x10] ss:$0 sm:$0xff] }
 0x101   : > { %v277_v35 = vpop.permute.xlu1 %276  ;;  %v275_v36 = vpop.permute.xlu0 %274  ;;  %1298 = vmatprep.subr.msk.mxu1 %vm314_vm0, %v309_v32  ;;  %1313 = vmatprep.subr.msk.mxu0 %vm314_vm0, %v766_v30 }
 0x102   : > { %v281_v37 = vsel %vm280_vm4, %v275_v36, %v277_v35  ;;  %v282_v38 = vsel %vm280_vm4, %v277_v35, %v275_v36  ;;  %1299 = vmatpush1.msk.msra.mxu1 %vm314_vm0, %v308_v31  ;;  %1314 = vmatpush1.msk.msra.mxu0 %vm314_vm0, %v765_v29  ;;  %v264_v29 = vld [vmem:[#allocation5 + $0x40] sm:$0xff] }
 0x103   : > { %v291_v40 = vmul.f32 %v286_v22, %v282_v38  ;;  %v292_v41 = vmul.f32 %v290_v23, %v281_v37  ;;  %1300 = vmatmul.mubr.msk.f32.vlgmr.msra.gmra.mrb[0].mxu1 %vm310_vm1, %v257_v33  ;;  %1315 = vmatmul.mubr.msk.f32.vlgmr.msra.gmra.mrb[0].mxu0 %vm310_vm1, %v261_v34 }
 0x104   : > { %465 = vmatprep.mubr.f32.mxu1 %v1642_v0  ;;  %939 = vmatprep.mubr.f32.mxu0 %v1642_v0 }
 0x105   : > { %v852_v44 = vpop.permute.xlu1 %851  ;;  %v850_v45 = vpop.permute.xlu0 %849  ;;  %1301 = vmatprep.subr.msk.mxu1 %vm314_vm0, %v292_v41 }
 0x106   : > { %v854_v46 = vsel %vm853_vm5, %v850_v45, %v852_v44  ;;  %v855_v47 = vsel %vm853_vm5, %v852_v44, %v850_v45  ;;  %1302 = vmatpush1.msk.msra.mxu1 %vm314_vm0, %v291_v40 }
 0x107   : > { %v864_v49 = vmul.f32 %v859_v39, %v854_v46  ;;  %v865_v50 = vmul.f32 %v863_v42, %v855_v47 }
 0x109   : > { %v475_v55 = vpop.permute.xlu1 %474  ;;  %v473_v56 = vpop.permute.xlu0 %472  ;;  %1316 = vmatprep.subr.msk.mxu0 %vm314_vm0, %v865_v50 }
 0x10a   : > { %v477_v57 = vsel %vm476_vm6, %v473_v56, %v475_v55  ;;  %v478_v58 = vsel %vm476_vm6, %v475_v55, %v473_v56  ;;  %1317 = vmatpush1.msk.msra.mxu0 %vm314_vm0, %v864_v49 }
 0x10b   : > { %v487_v60 = vmul.f32 %v482_v51, %v478_v58  ;;  %v488_v61 = vmul.f32 %v486_v52, %v477_v57  ;;  %1303 = vmatmul.mubr.msk.f32.vlgmr.msra.gmra.mrb[0].mxu1 %vm310_vm1, %v256_v53  ;;  %1318 = vmatmul.mubr.msk.f32.vlgmr.msra.gmra.mrb[0].mxu0 %vm310_vm1, %v262_v54 }
 0x10c   : > { %562 = vmatprep.mubr.f32.mxu1 %v1642_v0  ;;  %1038 = vmatprep.mubr.f32.mxu0 %v1642_v0 }
 0x10d   : > { %v951_v3 = vpop.permute.xlu1 %950  ;;  %v949_v4 = vpop.permute.xlu0 %948  ;;  %1304 = vmatprep.subr.msk.mxu1 %vm314_vm0, %v488_v61 }
 0x10e   : > { %v953_v5 = vsel %vm952_vm7, %v949_v4, %v951_v3  ;;  %v954_v6 = vsel %vm952_vm7, %v951_v3, %v949_v4  ;;  %1305 = vmatpush1.msk.msra.mxu1 %vm314_vm0, %v487_v60 }
 0x10f   : > { %v963_v9 = vmul.f32 %v958_v59, %v953_v5  ;;  %v964_v10 = vmul.f32 %v962_v62, %v954_v6 }
 0x111   : > { %v574_v16 = vpop.permute.xlu1 %573  ;;  %v572_v17 = vpop.permute.xlu0 %571  ;;  %1319 = vmatprep.subr.msk.mxu0 %vm314_vm0, %v964_v10 }
 0x112   : > { %v576_v18 = vsel %vm575_vm8, %v572_v17, %v574_v16  ;;  %v577_v19 = vsel %vm575_vm8, %v574_v16, %v572_v17  ;;  %1320 = vmatpush1.msk.msra.mxu0 %vm314_vm0, %v963_v9 }
 0x113   : > { %v586_v20 = vmul.f32 %v581_v13, %v577_v19  ;;  %v587_v21 = vmul.f32 %v585_v7, %v576_v18  ;;  %1306 = vmatmul.mubr.msk.f32.vlgmr.msra.gmra.mrb[0].mxu1 %vm310_vm1, %v258_v14  ;;  %1321 = vmatmul.mubr.msk.f32.vlgmr.msra.gmra.mrb[0].mxu0 %vm310_vm1, %v263_v15 }
 0x114   : > { %661 = vmatprep.mubr.f32.mxu1 %v1642_v0  ;;  %1137 = vmatprep.mubr.f32.mxu0 %v1642_v0 }
 0x115   : > { %v1050_v22 = vpop.permute.xlu1 %1049  ;;  %v1048_v23 = vpop.permute.xlu0 %1047  ;;  %1307 = vmatprep.subr.msk.mxu1 %vm314_vm0, %v587_v21 }
 0x116   : > { %v1052_v24 = vsel %vm1051_vm9, %v1048_v23, %v1050_v22  ;;  %v1053_v25 = vsel %vm1051_vm9, %v1050_v22, %v1048_v23  ;;  %1308 = vmatpush1.msk.msra.mxu1 %vm314_vm0, %v586_v20 }
 0x117   : > { %v1062_v26 = vmul.f32 %v1322_v11, %v1052_v24  ;;  %v1063_v27 = vmul.f32 %v1323_v12, %v1053_v25 }
 0x119   : > { %1324 = vmatprep.subr.msk.mxu0 %vm314_vm0, %v1063_v27 }
 0x11a   : > { %1325 = vmatpush1.msk.msra.mxu0 %vm314_vm0, %v1062_v26 }
 0x11b   : > { %1309 = vmatmul.mubr.msk.f32.vlgmr.msra.gmra.mrb[0].mxu1 %vm310_vm1, %v259_v28  ;;  %1326 = vmatmul.mubr.msk.f32.vlgmr.msra.gmra.mrb[0].mxu0 %vm310_vm1, %v264_v29 }
 0x126   : > { %v1149_v0 = vpop.permute.xlu0 %1148 }
 0x1ee   : > { %v663_v8 = vpop.f32.mrb[0].mxu1  ;;  %v1139_v30 = vpop.f32.mrb[0].mxu0 }
 0x1ef   : > { %v1334_v31 = vadd.f32 %v1139_v30, %v663_v8  ;;  %v665_v32 = vpop.f32.mrb[1].mxu1  ;;  %v1141_v33 = vpop.f32.mrb[1].mxu0 }
 0x1f0   : > { %v1335_v34 = vadd.f32 %v1141_v33, %v665_v32 }
 0x1f1   : > { %v1151_v35 = vadd.f32 %v1334_v31, %v1149_v0 }
 0x1f2   : > { %v1152_v36 = vadd.f32 %v1335_v34, %v1149_v0 }
 0x1f3   : > { %v1153_v37 = vmax.f32 %v1151_v35, 0.0 }
 0x1f4   : > { %v1154_v38 = vmax.f32 %v1152_v36, 0.0 }
 0x1f5   : > { %v1159_v1 = vrot.slane %v1153_v37, 4 }
 0x1f6   : > { %v1160_v2 = vrot.slane %v1154_v38, 4 }
 0x1f7   : > { %1163 = vst [vmem:[%s255_s26 + $0x10] ss:$-12 sps:$4 sm:$0xff] %v1159_v1  }
 0x1f8   : > { %1164 = vst [vmem:[%s255_s26 + $0x18] ss:$-12 sps:$4 sm:$0xff] %v1160_v2  }
 0x1f9   : > { %1571 = shalt.err (!%p1568_p4)
}
 0x1fa   : > { %s1572_s7 = scalar_lea.hbm %s1997_s8, 512  ;;  %s1576_s12 = scalar_lea.hbm %s2046_s4, 1024 }
 0x1fb   : > { %p1573_p0 = scmp.ne.s32.totalorder %s1997_s8, %s1572_s7  ;;  %p1577_p11 = scmp.lt.u32.totalorder %s1997_s8, %s2046_s4 }
 0x1fc   : > { %p1578_p13 = scmp.lt.u32.totalorder %s1576_s12, %s1572_s7  ;;  %p1580_p10 = scmp.lt.u32.totalorder %s1572_s7, %s1997_s8 }
 0x1fd   : > { %p1574_p9 = pnand %p1573_p0, %p1824_p5 }
 0x1fe   : > { %p1579_p6 = por %p1578_p13, %p1577_p11 }
 0x1ff   : > { %p1575_p8 = pneg %p1574_p9 }
 0x200   : > { %p1581_p3 = por %p1580_p10, %p1579_p6 }
 0x202   : > { %p1582_p7 = pnand %p1581_p3, %p1575_p8 }
 0x204   : > { %1585 = shalt.err (!%p1582_p7)
}
 0x205   : > { %s1653_s24 = smov 256  }
 0x206   : > { %1364 = dma.vmem_to_hbm [thread:$0]  (%p1824_p5), %s1992_s30, 512, %s1997_s8, %s1168_s9, %s1653_s24, %s1653_s24, %s1644_s23  }
 0x207 PF: > { %s1196_s27 = sand.u32 1, %s1620_s15   ;;  %p2064_p12 = scmp.ne.s32.totalorder %s2051_s22, 0 }
 0x208   : > { %p2065_p2 = scmp.ge.s32.totalorder %s1632_s18, 2  ;;  %s1197_s10 = scalar_lea.sflag [#allocation4], %s1196_s27 }
 0x20a   : > { %p1381_p1 = pnand %p2065_p2, %p2064_p12 }
 0x20c   : > { %1615 = dma.done.wait (!%p1381_p1), %s1197_s10, 512  }
 0x20d   : > { %1617 = vsyncadd (!%p1381_p1), %s1197_s10, 4294966784  ;;  %p19_p4 = scmp.ge.s32.totalorder %s1810_s11, 4   ;;  %s2066_s15 = smov %s1624_s16 }
 0x20e   : > { %s2067_s16 = smov %s1628_s17  ;;  %s2068_s17 = smov %s1820_s13 }
 0x20f   : > { %s2069_s18 = smov %s1810_s11  ;;  %21 = sbr.rel (!%p19_p4) target bundleno = 7 (0x7), region = 93 }
 0x216   :  { %1202 = vsyncpa [#allocation3], 1 }
 0x217   :  { %1204 = vsyncpa [#allocation3 + $0x1], 1 }
 0x218   :  { %1205 = vsyncpa [#allocation6], 1 }
 0x219   :  { %1206 = vsyncpa [#allocation9], 1 }
 0x21a   :  { %1207 = vsyncpa [#allocation4], 1 }
 0x21b   :  { %1209 = vsyncpa [#allocation4 + $0x1], 1 }

</bundles_post_ra>
